<compile_context>
chip_gen: v6e
topology: v6e:2x2x1
jax: 0.10.0
libtpu: 0.0.40
codegen_flags: <defaults>
</compile_context>

<pallas_src>
import jax
import jax.numpy as jnp
from jax.experimental import pallas as pl
from jax.experimental.pallas import tpu as pltpu


def _center_loss_kernel(x_ref, labels_ref, ct_ref, out_ref):
    x = x_ref[...]            # (B, D)   f32
    labels = labels_ref[...]  # (B, TC)  f32  (class tile, lane-dense)
    ct = ct_ref[...]          # (D, TC)  f32  (centers^T class tile)
    b = x.shape[0]

    # Cross term on the MXU: (B, D) @ (D, TC) -> (B, TC), f32 accumulation.
    xc = jnp.dot(x, ct, preferred_element_type=jnp.float32)

    # ||x_b||^2 per batch row (cheap, once per class tile).
    xsq = jnp.sum(x * x, axis=1, keepdims=True)                         # (B, 1)

    term1 = jnp.sum(labels * labels * xsq, axis=0, keepdims=True)       # (1, TC)
    term2 = jnp.sum(labels * xc, axis=0, keepdims=True)                 # (1, TC)
    term3 = jnp.float32(b) * jnp.sum(ct * ct, axis=0, keepdims=True)    # (1, TC)

    dist = term1 - 2.0 * term2 + term3                                  # (1, TC)
    denom = jnp.sum(labels, axis=0, keepdims=True) + 1e-8               # (1, TC)
    # Exact divide (NOT pl.reciprocal(approx=True)): denom can be ~1e-8.
    out_ref[...] = dist / denom


def multi_label_center_loss(x, labels, centers, *, class_tile=256):
    """Pallas forward of MultiLabelCenterLoss; returns the scalar f32 loss."""
    B, D = x.shape
    C, Dc = centers.shape
    assert D == Dc and labels.shape == (B, C)

    x = x.astype(jnp.float32)
    labels = labels.astype(jnp.float32)
    ct = centers.astype(jnp.float32).T            # (D, C): class axis lane-dense

    # Lane-dense class tile (multiple of 128); pad C up to a tile multiple.
    tc = min(class_tile, ((C + 127) // 128) * 128)
    c_pad = ((C + tc - 1) // tc) * tc
    if c_pad != C:
        # Zero-padded classes: labels==0 and centers==0 -> dist==0 -> 0 loss.
        labels = jnp.pad(labels, ((0, 0), (0, c_pad - C)))
        ct = jnp.pad(ct, ((0, 0), (0, c_pad - C)))

    per_class = pl.pallas_call(
        _center_loss_kernel,
        out_shape=jax.ShapeDtypeStruct((1, c_pad), jnp.float32),
        grid_spec=pltpu.PrefetchScalarGridSpec(
            num_scalar_prefetch=0,
            grid=(c_pad // tc,),
            in_specs=[
                pl.BlockSpec((B, D), lambda i: (0, 0)),    # x: resident
                pl.BlockSpec((B, tc), lambda i: (0, i)),   # labels class tile
                pl.BlockSpec((D, tc), lambda i: (0, i)),   # centers^T class tile
            ],
            out_specs=pl.BlockSpec((1, tc), lambda i: (0, i)),
        ),
        compiler_params=pltpu.CompilerParams(
            dimension_semantics=("parallel",),      # class tiles are independent -> both TCs on v7x
            vmem_limit_bytes=48 * 1024 * 1024,      # explicit (v5e scoped default is only 16 MiB)
        ),
    )(x, labels, ct)

    # Tiny lane-dense reduce + 1/B done in the wrapper (keeps the grid axis parallel).
    return jnp.sum(per_class) / jnp.float32(B)


def _reference_loss(x, labels, centers):
    # Pure-JAX mirror of the PyTorch forward (for validation).
    B = x.shape[0]
    loss = 0.0
    for i in range(centers.shape[0]):
        mask = labels[:, i:i + 1]
        class_features = x * mask
        class_center = centers[i:i + 1]
        distance = (class_features - class_center) ** 2
        loss = loss + distance.sum() / (mask.sum() + 1e-8)
    return loss / B


if __name__ == "__main__":
    batch = 8
    num_classes = 4
    feat_dim = 32

    key = jax.random.PRNGKey(0)
    kx, kl, kc = jax.random.split(key, 3)

    x = jax.random.normal(kx, (batch, feat_dim), dtype=jnp.float32)
    # multi-hot labels (float, like the PyTorch usage x * class_mask)
    labels = (jax.random.uniform(kl, (batch, num_classes)) > 0.5).astype(jnp.float32)
    # centers parameter: deterministic init standing in for torch.randn(num_classes, feat_dim)
    centers = jax.random.normal(kc, (num_classes, feat_dim), dtype=jnp.float32)

    loss = multi_label_center_loss(x, labels, centers)
    jax.block_until_ready(loss)

    ref = _reference_loss(x, labels, centers)
    assert jnp.allclose(loss, ref, rtol=1e-4, atol=1e-4), (loss, ref)

    print("KERNEL_OK")
</pallas_src>

<mosaic_0001>
module attributes {stable_mosaic.version = 11 : i64} {
  func.func @_center_loss_kernel(%arg0: i32, %arg1: memref<8x32xf32, #tpu.memory_space<vmem>>, %arg2: memref<8x128xf32, #tpu.memory_space<vmem>>, %arg3: memref<32x128xf32, #tpu.memory_space<vmem>>, %arg4: memref<1x128xf32, #tpu.memory_space<vmem>>) attributes {dimension_semantics = [#tpu.dimension_semantics<parallel>], iteration_bounds = array<i64: 1>, scalar_prefetch = 0 : i64, scratch_operands = 0 : i64, tpu.core_type = #tpu.core_type<tc>, window_params = [{pipeline_mode = #tpu.pipeline_mode<synchronous>, transform_indices = @transform_0, window_bounds = array<i64: 8, 32>}, {transform_indices = @transform_1, window_bounds = array<i64: 8, 128>}, {transform_indices = @transform_2, window_bounds = array<i64: 32, 128>}, {transform_indices = @transform_3, window_bounds = array<i64: 1, 128>}]} {
    %c0 = arith.constant 0 : index
    %c0_0 = arith.constant 0 : index
    %0 = vector.load %arg1[%c0, %c0_0] : memref<8x32xf32, #tpu.memory_space<vmem>>, vector<8x32xf32>
    %c0_1 = arith.constant 0 : index
    %c0_2 = arith.constant 0 : index
    %1 = vector.load %arg2[%c0_1, %c0_2] : memref<8x128xf32, #tpu.memory_space<vmem>>, vector<8x128xf32>
    %c0_3 = arith.constant 0 : index
    %c0_4 = arith.constant 0 : index
    %2 = vector.load %arg3[%c0_3, %c0_4] : memref<32x128xf32, #tpu.memory_space<vmem>>, vector<32x128xf32>
    %cst = arith.constant dense<0.000000e+00> : vector<8x128xf32>
    %3 = tpu.matmul %0, %2, %cst {dimension_numbers = #tpu.dot_dimension_numbers<[1], [0], [0], [1], [0, 0, 1, 1], [], []>} : vector<8x32xf32>, vector<32x128xf32>, vector<8x128xf32> -> vector<8x128xf32>
    %4 = arith.mulf %0, %0 : vector<8x32xf32>
    %cst_5 = arith.constant dense<0.000000e+00> : vector<8xf32>
    %5 = vector.multi_reduction <add>, %4, %cst_5 [1] : vector<8x32xf32> to vector<8xf32>
    %6 = vector.shape_cast %5 : vector<8xf32> to vector<8x1xf32>
    %7 = arith.mulf %1, %1 : vector<8x128xf32>
    %8 = vector.broadcast %6 : vector<8x1xf32> to vector<8x128xf32>
    %9 = arith.mulf %7, %8 : vector<8x128xf32>
    %cst_6 = arith.constant dense<0.000000e+00> : vector<128xf32>
    %10 = vector.multi_reduction <add>, %9, %cst_6 [0] : vector<8x128xf32> to vector<128xf32>
    %11 = vector.shape_cast %10 : vector<128xf32> to vector<1x128xf32>
    %12 = arith.mulf %1, %3 : vector<8x128xf32>
    %cst_7 = arith.constant dense<0.000000e+00> : vector<128xf32>
    %13 = vector.multi_reduction <add>, %12, %cst_7 [0] : vector<8x128xf32> to vector<128xf32>
    %14 = vector.shape_cast %13 : vector<128xf32> to vector<1x128xf32>
    %15 = arith.mulf %2, %2 : vector<32x128xf32>
    %cst_8 = arith.constant dense<0.000000e+00> : vector<128xf32>
    %16 = vector.multi_reduction <add>, %15, %cst_8 [0] : vector<32x128xf32> to vector<128xf32>
    %17 = vector.shape_cast %16 : vector<128xf32> to vector<1x128xf32>
    %cst_9 = arith.constant 8.000000e+00 : f32
    %18 = vector.broadcast %cst_9 : f32 to vector<1x128xf32>
    %19 = arith.mulf %18, %17 : vector<1x128xf32>
    %cst_10 = arith.constant 2.000000e+00 : f32
    %20 = vector.broadcast %cst_10 : f32 to vector<1x128xf32>
    %21 = arith.mulf %20, %14 : vector<1x128xf32>
    %22 = arith.subf %11, %21 : vector<1x128xf32>
    %23 = arith.addf %22, %19 : vector<1x128xf32>
    %cst_11 = arith.constant dense<0.000000e+00> : vector<128xf32>
    %24 = vector.multi_reduction <add>, %1, %cst_11 [0] : vector<8x128xf32> to vector<128xf32>
    %25 = vector.shape_cast %24 : vector<128xf32> to vector<1x128xf32>
    %cst_12 = arith.constant 9.99999993E-9 : f32
    %26 = vector.broadcast %cst_12 : f32 to vector<1x128xf32>
    %27 = arith.addf %25, %26 : vector<1x128xf32>
    %28 = arith.divf %23, %27 : vector<1x128xf32>
    %c0_13 = arith.constant 0 : index
    %c0_14 = arith.constant 0 : index
    %29 = vector.load %arg4[%c0_13, %c0_14] : memref<1x128xf32, #tpu.memory_space<vmem>>, vector<1x128xf32>
    tpu.vector_store %arg4[%c0_13, %c0_14], %28 {strides = array<i32>} : memref<1x128xf32, #tpu.memory_space<vmem>>, vector<1x128xf32>,
    return
  }
  func.func @transform_0(%arg0: i32) -> (i32, i32) {
    %c0_i32 = arith.constant 0 : i32
    %c0_i32_0 = arith.constant 0 : i32
    %c0_i32_1 = arith.constant 0 : i32
    return %c0_i32, %c0_i32_0 : i32, i32
  }
  func.func @transform_1(%arg0: i32) -> (i32, i32) {
    %c0_i32 = arith.constant 0 : i32
    %c0_i32_0 = arith.constant 0 : i32
    return %c0_i32, %arg0 : i32, i32
  }
  func.func @transform_2(%arg0: i32) -> (i32, i32) {
    %c0_i32 = arith.constant 0 : i32
    %c0_i32_0 = arith.constant 0 : i32
    return %c0_i32, %arg0 : i32, i32
  }
  func.func @transform_3(%arg0: i32) -> (i32, i32) {
    %c0_i32 = arith.constant 0 : i32
    %c0_i32_0 = arith.constant 0 : i32
    return %c0_i32, %arg0 : i32, i32
  }
}

</mosaic_0001>

<bundles_post_ra>
// kernel: tpu_custom_call.1
= control target key start
LH: loop header
LB: loop body
LE: loop exit
PB: predicated region body
PF: predicated region fallthrough
CT: control target
= control target key end

     0   :  { %8 = vsyncpa [#allocation3], 0  ;;  %s347_s0 = inlined_call_operand.hbm [shape: f32[8,32], index: 0, kind: input, shape index: {}]   ;;  %s348_s1 = inlined_call_operand.hbm [shape: f32[8,128], index: 1, kind: input, shape index: {}]   ;;  %s349_s2 = inlined_call_operand.hbm [shape: f32[32,128], index: 2, kind: input, shape index: {}]   ;;  %s350_s3 = inlined_call_operand.hbm [shape: f32[1,128], index: 3, kind: output, shape index: {}]  }
   0x1   :  { %9 = vsyncpa [#allocation6], 0 }
   0x2   :  { %10 = vsyncpa [#allocation4], 0  ;;  %s307_s12 = smov [#allocation5]   ;;  %s308_s14 = smov [#allocation2]  }
   0x3   :  { %s27_s13 = sshll.u32 %s307_s12, 4  ;;  %s17_s15 = sshll.u32 %s308_s14, 4  ;;  %s28_s13 = int_to_ptr.vmem [resolvable:$true] %s27_s13  ;;  %s18_s15 = int_to_ptr.vmem [resolvable:$true] %s17_s15 }
   0x4   :  { %s229_s16 = scalar_lea.vmem %s28_s13, 128  ;;  %p234_p1 = scmp.lt.s32.totalorder %s28_s13, %s28_s13 }
   0x5   :  { %p230_p0 = scmp.ne.s32.totalorder %s28_s13, %s229_s16  ;;  %p235_p2 = scmp.lt.s32.totalorder %s229_s16, %s229_s16 }
   0x7   :  { %p236_p3 = por %p235_p2, %p234_p1 }
   0x9   :  { %p237_p4 = pnand %p236_p3, %p230_p0 }
   0xb   :  { %240 = shalt.err (!%p237_p4)
}
   0xc   :  { %30 = dma.hbm_to_vmem [thread:$0]  %s348_s1, 128, %s28_s13, [#allocation6]  }
   0xd   :  { %s249_s19 = scalar_lea.vmem %s18_s15, 128  ;;  %p254_p6 = scmp.lt.s32.totalorder %s18_s15, %s18_s15 }
   0xe   :  { %p250_p5 = scmp.ne.s32.totalorder %s18_s15, %s249_s19  ;;  %p255_p7 = scmp.lt.s32.totalorder %s249_s19, %s249_s19 }
  0x10   :  { %p256_p8 = por %p255_p7, %p254_p6 }
  0x12   :  { %p257_p9 = pnand %p256_p8, %p250_p5 }
  0x14   :  { %260 = shalt.err (!%p257_p9)
}
  0x15   :  { %20 = dma.hbm_to_vmem [thread:$0]  %s347_s0, 128, %s18_s15, [#allocation3]  }
  0x16   :  { %s309_s22 = smov [#allocation7]  }
  0x17   :  { %s36_s23 = sshll.u32 %s309_s22, 4  ;;  %s37_s23 = int_to_ptr.vmem [resolvable:$true] %s36_s23 }
  0x18   :  { %s269_s24 = scalar_lea.vmem %s37_s23, 512  ;;  %p274_p11 = scmp.lt.s32.totalorder %s37_s23, %s37_s23 }
  0x19   :  { %p270_p10 = scmp.ne.s32.totalorder %s37_s23, %s269_s24  ;;  %p275_p12 = scmp.lt.s32.totalorder %s269_s24, %s269_s24 }
  0x1b   :  { %p276_p13 = por %p275_p12, %p274_p11 }
  0x1d   :  { %p277_p0 = pnand %p276_p13, %p270_p10 }
  0x1f   :  { %280 = shalt.err (!%p277_p0)
}
  0x20   :  { %s310_s1 = smov 128   ;;  %s311_s25 = smov 8  }
  0x21   :  { %42 = dma.hbm_to_vmem [thread:$0]  %s349_s2, 512, %s37_s23, [#allocation6], %s310_s1, %s310_s1, %s311_s25  }
  0x22   :  { %301 = dma.done.wait [#allocation3], 128  }
  0x23   :  { %302 = vsyncadd [#allocation3], 4294967168 }
  0x24   :  { %303 = dma.done.wait [#allocation6], 640  }
  0x25   :  { %304 = vsyncadd [#allocation6], 4294966656  ;;  %v312_v0 = vmov 0.0   ;;  %vm313_vm0 = vmmov 0   ;;  %v57_v1 = vld [vmem:[#allocation7 + $0x18] sm:$0xff]  ;;  %v56_v2 = vld [vmem:[#allocation7 + $0x10] sm:$0xff] }
  0x26   :  { %200 = vmatprep.subr.mxu0 %v312_v0  ;;  %208 = vmatprep.mubr.msk.f32.mxu0 %vm313_vm0, %v312_v0  ;;  %v55_v3 = vld [vmem:[#allocation7 + $0x8] sm:$0xff]  ;;  %v54_v5 = vld [vmem:[#allocation7] sm:$0xff]  ;;  %v52_v6 = vld [vmem:[#allocation2] sm:$0xff]  ;;  %v153_v7 = vmul.f32 %v56_v2, %v56_v2  ;;  %vm58_vm1 = vcmask 261120   ;;  %v154_v10 = vmul.f32 %v57_v1, %v57_v1  ;;  %s314_s0 = smov [#allocation8]  }
  0x27   :  { %201 = vmatpush3.msra.mxu0 %v57_v1  ;;  %v152_v4 = vmul.f32 %v55_v3, %v55_v3  ;;  %v151_v8 = vmul.f32 %v54_v5, %v54_v5  ;;  %v132_v9 = vmul.f32 %v52_v6, %v52_v6  ;;  %v53_v15 = vld [vmem:[#allocation5] sm:$0xff]  ;;  %s184_s2 = sshll.u32 %s314_s0, 4  ;;  %s185_s2 = int_to_ptr.vmem [resolvable:$true] %s184_s2 }
  0x28   :  { %202 = vmatprep.subr.mxu0 %v312_v0  ;;  %v168_v16 = vrot.slane %v53_v15, 4  ;;  %v136_v19 = vmul.f32 %v53_v15, %v53_v15  ;;  %s281_s28 = scalar_lea.vmem %s185_s2, 16  ;;  %s285_s29 = scalar_lea.vmem %s185_s2, 32 }
  0x29   :  { %203 = vmatpush3.msra.mxu0 %v56_v2  ;;  %v155_v11 = vadd.f32 %v152_v4, %v151_v8  ;;  %v133_v12 = vsel %vm58_vm1, %v132_v9, 0.0  ;;  %p282_p1 = scmp.ne.s32.totalorder %s185_s2, %s281_s28  ;;  %p286_p2 = scmp.lt.s32.totalorder %s185_s2, %s185_s2 }
  0x2a   :  { %204 = vmatprep.subr.mxu0 %v312_v0  ;;  %134 = vadd.xlane.f32.xlu0 %v133_v12  ;;  %v169_v17 = vadd.f32 %v168_v16, %v53_v15  ;;  %p287_p3 = scmp.lt.s32.totalorder %s285_s29, %s281_s28 }
  0x2b   :  { %205 = vmatpush3.msra.mxu0 %v55_v3  ;;  %v156_v13 = vadd.f32 %v155_v11, %v153_v7 }
  0x2c   :  { %206 = vmatprep.subr.mxu0 %v312_v0  ;;  %v170_v18 = vrot.slane %v169_v17, 2  ;;  %p288_p4 = por %p287_p3, %p286_p2 }
  0x2d   :  { %207 = vmatpush3.msra.mxu0 %v54_v5  ;;  %v157_v14 = vadd.f32 %v156_v13, %v154_v10 }
  0x2e   :  { %209 = vmatmul.mubr.msk.f32.vlgmr.msra.gmra.mxu0 %vm58_vm1, %v52_v6  ;;  %v171_v21 = vadd.f32 %v170_v18, %v169_v17  ;;  %p289_p5 = pnand %p288_p4, %p282_p1 }
  0x2f   :  { %v158_v22 = vrot.slane %v157_v14, 4 }
  0x30   :  { %v172_v24 = vrot.slane %v171_v21, 1 }
  0x31   :  { %v159_v25 = vadd.f32 %v158_v22, %v157_v14 }
  0x32   :  { %v173_v27 = vadd.f32 %v172_v24, %v171_v21 }
  0x33   :  { %v160_v29 = vrot.slane %v159_v25, 2 }
  0x34   :  { %v174_v31 = vadd.f32 1e-08, %v173_v27 }
  0x35   :  { %v161_v36 = vadd.f32 %v160_v29, %v159_v25 }
  0x36   :  { %219 = vrcp.f32 %v174_v31 }
  0x37   :  { %v162_v40 = vrot.slane %v161_v36, 1 }
  0x39   :  { %v163_v44 = vadd.f32 %v162_v40, %v161_v36 }
  0x3b   :  { %v164_v48 = vmul.f32 8.0, %v163_v44 }
  0x43   :  { %v220_v50 = vpop.eup %219 }
  0xb3   :  { %v135_v20 = vpop.xlane.xlu0 %134 }
  0xb4   :  { %v137_v23 = vmul.f32 %v136_v19, %v135_v20 }
  0xb6   :  { %v138_v26 = vrot.slane %v137_v23, 4 }
  0xb8   :  { %v139_v28 = vadd.f32 %v138_v26, %v137_v23 }
  0xba   :  { %v140_v34 = vrot.slane %v139_v28, 2 }
  0xbc   :  { %v141_v38 = vadd.f32 %v140_v34, %v139_v28 }
  0xbe   :  { %v142_v42 = vrot.slane %v141_v38, 1 }
  0xc0   :  { %v143_v46 = vadd.f32 %v142_v42, %v141_v38 }
  0xee   :  { %v128_v30 = vpop.f32.mrf.mxu0 }
  0xef   :  { %v144_v32 = vmul.f32 %v128_v30, %v53_v15 }
  0xf0   :  { %v210_v33 = vpop.f32.mrf.mxu0 }
  0xf1   :  { %v145_v35 = vrot.slane %v144_v32, 4 }
  0xf3   :  { %v146_v37 = vadd.f32 %v145_v35, %v144_v32 }
  0xf5   :  { %v147_v39 = vrot.slane %v146_v37, 2 }
  0xf7   :  { %v148_v41 = vadd.f32 %v147_v39, %v146_v37 }
  0xf9   :  { %v149_v43 = vrot.slane %v148_v41, 1 }
  0xfb   :  { %v150_v45 = vadd.f32 %v149_v43, %v148_v41 }
  0xfd   :  { %v165_v47 = vmul.f32 2.0, %v150_v45 }
  0xff   :  { %v166_v49 = vsub.f32 %v143_v46, %v165_v47 }
 0x101   :  { %v167_v51 = vadd.f32 %v166_v49, %v164_v48 }
 0x103   :  { %v176_v52 = vmul.f32 %v220_v50, %v167_v51 }
 0x105   :  { %177 = vst [vmem:[#allocation8] sm:$0x1] %v176_v52 }
 0x106   :  { %292 = shalt.err (!%p289_p5)
}
 0x107   :  { %187 = dma.vmem_to_hbm [thread:$0]  %s185_s2, 16, %s350_s3, [#allocation4]  }
 0x108   :  { %305 = dma.done.wait [#allocation4], 16  }
 0x109   :  { %306 = vsyncadd [#allocation4], 4294967280 }
 0x10a   :  { %191 = vsyncpa [#allocation3], 1 }
 0x10b   :  { %192 = vsyncpa [#allocation6], 1 }
 0x10c   :  { %193 = vsyncpa [#allocation4], 1 }

</bundles_post_ra>
